<compile_context>
chip_gen: v5e
topology: v5e:2x2
jax: 0.10.0
libtpu: 0.0.40
codegen_flags: <defaults>
</compile_context>

<pallas_src>
from functools import partial

import jax
import jax.numpy as jnp
import numpy as np
from jax import lax
from jax.experimental import pallas as pl
from jax.experimental.pallas import tpu as pltpu


def _round_up(x, m):
    return (x + m - 1) // m * m


def _dot_nt(x, w):
    # x: (tm, tk), w: (tn, tk)  -> (tm, tn); contract the K (last) axis of
    # both so the weight never needs a transpose in HBM or in the kernel.
    return lax.dot_general(
        x, w, (((1,), (1,)), ((), ())), preferred_element_type=jnp.float32
    )


def _linear_kernel_single_k(*refs, has_bias):
    # Fast path: whole K reduction fits one grid step -> no accumulator.
    x_ref, w_ref = refs[0], refs[1]
    b_ref = refs[2] if has_bias else None
    o_ref = refs[3] if has_bias else refs[2]

    out = _dot_nt(x_ref[...], w_ref[...])
    if has_bias:
        out = out + b_ref[...].astype(jnp.float32)
    o_ref[...] = out.astype(o_ref.dtype)


def _linear_kernel_multi_k(*refs, has_bias):
    x_ref, w_ref = refs[0], refs[1]
    b_ref = refs[2] if has_bias else None
    o_ref = refs[3] if has_bias else refs[2]
    acc_ref = refs[4] if has_bias else refs[3]

    kk = pl.program_id(2)
    prod = _dot_nt(x_ref[...], w_ref[...])

    @pl.when(kk == 0)
    def _first():
        acc_ref[...] = prod          # direct store: no zero-init + RMW

    @pl.when(kk != 0)
    def _rest():
        acc_ref[...] += prod

    @pl.when(kk == pl.num_programs(2) - 1)
    def _finalize():
        out = acc_ref[...]
        if has_bias:
            out = out + b_ref[...].astype(jnp.float32)
        o_ref[...] = out.astype(o_ref.dtype)


def _select_tiles(m, k, n, sub_m, tm, tn, tk):
    tm = min(tm, _round_up(m, sub_m))
    tn = min(tn, _round_up(n, 128))
    kp128 = _round_up(k, 128)
    # Fewer, fatter K steps; take the full padded K when it is modest.
    tk = kp128 if kp128 <= 2048 else min(tk, kp128)

    # Adaptive tm: keep dead-row padding (wasted MXU work + HBM traffic) small.
    while tm > sub_m:
        mp = _round_up(m, tm)
        if (mp - m) / mp <= 0.15:
            break
        tm = max(sub_m, _round_up(tm // 2, sub_m))

    # v7x megacore: if M collapses to one tile row, shrink tn (128-multiples)
    # so the 'parallel' grid axes still offer >= 2 points to shard.
    if _round_up(m, tm) // tm == 1:
        while _round_up(n, tn) // tn < 2 and tn > 128:
            new_tn = max(128, _round_up(tn // 2, 128))
            if new_tn == tn:
                break
            tn = new_tn
    return tm, tn, tk


def linear_pallas(x, weight, bias=None, *, tm=512, tn=512, tk=1024,
                  operand_dtype=jnp.bfloat16):
    """y = x @ weight.T (+ bias), matching torch Linear.forward.

    x:      (..., in_features)
    weight: (out_features, in_features)   -- used in its native layout
    bias:   (out_features,) or None
    returns (..., out_features) in x.dtype
    """
    n, k = weight.shape
    assert x.shape[-1] == k, "in_features mismatch"

    out_dtype = x.dtype
    lead_shape = x.shape[:-1]
    x2 = x.reshape(-1, k)
    m = x2.shape[0]

    op_dtype = jnp.dtype(operand_dtype) if operand_dtype is not None else jnp.dtype(x.dtype)
    # Min sublane tile: 8 for 4-byte, 16 for 2-byte operands.
    sub_m = 8 if op_dtype.itemsize == 4 else 16

    tm, tn, tk = _select_tiles(m, k, n, sub_m, tm, tn, tk)
    mp = _round_up(m, tm)
    kp = _round_up(k, tk)
    np_ = _round_up(n, tn)

    # Cast MXU operands (f32 accumulation is kept inside the kernel); pad only
    # when a dimension is not already tile-aligned.
    x_op = x2.astype(op_dtype)
    w_op = weight.astype(op_dtype)
    if (mp, kp) != (m, k):
        x_op = jnp.pad(x_op, ((0, mp - m), (0, kp - k)))
    if (np_, kp) != (n, k):
        w_op = jnp.pad(w_op, ((0, np_ - n), (0, kp - k)))

    has_bias = bias is not None
    inputs = [x_op, w_op]
    in_specs = [
        pl.BlockSpec((tm, tk), lambda i, j, kk: (i, kk)),   # x  (M, K)
        pl.BlockSpec((tn, tk), lambda i, j, kk: (j, kk)),   # W  (N, K) native
    ]
    if has_bias:
        b = bias.astype(out_dtype)
        if np_ != n:
            b = jnp.pad(b, (0, np_ - n))
        inputs.append(b.reshape(1, np_))
        in_specs.append(pl.BlockSpec((1, tn), lambda i, j, kk: (0, j)))

    k_steps = kp // tk
    if k_steps > 1:
        kernel = partial(_linear_kernel_multi_k, has_bias=has_bias)
        scratch = [pltpu.VMEM((tm, tn), jnp.float32)]
    else:
        kernel = partial(_linear_kernel_single_k, has_bias=has_bias)
        scratch = []

    out_itemsize = jnp.dtype(out_dtype).itemsize
    cost = pl.CostEstimate(
        flops=2 * mp * kp * np_,
        transcendentals=0,
        bytes_accessed=(mp * kp + np_ * kp) * op_dtype.itemsize
        + mp * np_ * out_itemsize
        + (np_ * out_itemsize if has_bias else 0),
    )

    out = pl.pallas_call(
        kernel,
        out_shape=jax.ShapeDtypeStruct((mp, np_), out_dtype),
        grid_spec=pltpu.PrefetchScalarGridSpec(
            num_scalar_prefetch=0,
            grid=(mp // tm, np_ // tn, k_steps),
            in_specs=in_specs,
            out_specs=pl.BlockSpec((tm, tn), lambda i, j, kk: (i, j)),
            scratch_shapes=scratch,
        ),
        compiler_params=pltpu.CompilerParams(
            dimension_semantics=("parallel", "parallel", "arbitrary"),
            # Safe on v7x (64 MiB physical) and far above our tile footprint;
            # v5e/v6e (128 MiB physical) have ample headroom at this limit.
            vmem_limit_bytes=48 * 1024 * 1024,
        ),
        cost_estimate=cost,
    )(*inputs)

    out = out[:m, :n]
    return out.reshape(*lead_shape, n)


def init_linear_params(key, in_features, out_features,
                       init_mode="kaiming_normal", init_weight=1.0, init_bias=0.0):
    """Re-implementation of weight_init() for the default ('kaiming_normal') mode."""
    fan_in = in_features
    kw_key, kb_key = jax.random.split(key)
    if init_mode == "kaiming_normal":
        w = np.sqrt(1.0 / fan_in) * jax.random.normal(
            kw_key, (out_features, in_features), dtype=jnp.float32)
        b = np.sqrt(1.0 / fan_in) * jax.random.normal(
            kb_key, (out_features,), dtype=jnp.float32)
    else:
        raise ValueError(f'Invalid init mode "{init_mode}"')
    return w * init_weight, b * init_bias


if __name__ == "__main__":
    key = jax.random.PRNGKey(0)
    x_key, p_key = jax.random.split(key)

    # Small shapes consistent with the module: batch=2, seq=8, hidden(in)=32.
    B, S, IN_F, OUT_F = 2, 8, 32, 64

    x = jax.random.normal(x_key, (B, S, IN_F), dtype=jnp.float32)
    # init_bias=1.0 so the bias-add path is exercised (module default is 0).
    weight, bias = init_linear_params(p_key, IN_F, OUT_F, init_bias=1.0)

    y = jax.block_until_ready(linear_pallas(x, weight, bias))
    assert y.shape == (B, S, OUT_F) and y.dtype == x.dtype

    # Reference with the same operand precision (bf16 multiply, f32 accumulate).
    xb = x.astype(jnp.bfloat16)
    wb = weight.astype(jnp.bfloat16)
    y_ref = jnp.einsum("bsk,nk->bsn", xb, wb,
                       preferred_element_type=jnp.float32) + bias[None, None, :]
    np.testing.assert_allclose(np.asarray(y), np.asarray(y_ref), rtol=2e-3, atol=2e-3)

    # Also check the bias=None (bias-free kernel) path.
    y_nb = jax.block_until_ready(linear_pallas(x, weight, None))
    y_nb_ref = jnp.einsum("bsk,nk->bsn", xb, wb, preferred_element_type=jnp.float32)
    np.testing.assert_allclose(np.asarray(y_nb), np.asarray(y_nb_ref),
                               rtol=2e-3, atol=2e-3)

    print("KERNEL_OK")
</pallas_src>

<mosaic_0001>
module attributes {stable_mosaic.version = 11 : i64} {
  func.func @_linear_kernel_single_k(%arg0: i32, %arg1: i32, %arg2: i32, %arg3: memref<16x128xbf16, #tpu.memory_space<vmem>>, %arg4: memref<128x128xbf16, #tpu.memory_space<vmem>>, %arg5: memref<1x128xf32, #tpu.memory_space<vmem>>, %arg6: memref<16x128xf32, #tpu.memory_space<vmem>>) attributes {dimension_semantics = [#tpu.dimension_semantics<parallel>, #tpu.dimension_semantics<parallel>, #tpu.dimension_semantics<arbitrary>], iteration_bounds = array<i64: 1, 1, 1>, scalar_prefetch = 0 : i64, scratch_operands = 0 : i64, tpu.core_type = #tpu.core_type<tc>, window_params = [{transform_indices = @transform_0, window_bounds = array<i64: 16, 128>}, {transform_indices = @transform_1, window_bounds = array<i64: 128, 128>}, {transform_indices = @transform_2, window_bounds = array<i64: 1, 128>}, {transform_indices = @transform_3, window_bounds = array<i64: 16, 128>}]} {
    %c0 = arith.constant 0 : index
    %c0_0 = arith.constant 0 : index
    %0 = vector.load %arg3[%c0, %c0_0] : memref<16x128xbf16, #tpu.memory_space<vmem>>, vector<16x128xbf16>
    %c0_1 = arith.constant 0 : index
    %c0_2 = arith.constant 0 : index
    %1 = vector.load %arg4[%c0_1, %c0_2] : memref<128x128xbf16, #tpu.memory_space<vmem>>, vector<128x128xbf16>
    %cst = arith.constant dense<0.000000e+00> : vector<16x128xf32>
    %2 = tpu.matmul %0, %1, %cst {dimension_numbers = #tpu.dot_dimension_numbers<[1], [1], [0], [0], [0, 0, 1, 0], [], []>} : vector<16x128xbf16>, vector<128x128xbf16>, vector<16x128xf32> -> vector<16x128xf32>
    %c0_3 = arith.constant 0 : index
    %c0_4 = arith.constant 0 : index
    %3 = vector.load %arg5[%c0_3, %c0_4] : memref<1x128xf32, #tpu.memory_space<vmem>>, vector<1x128xf32>
    %4 = vector.broadcast %3 : vector<1x128xf32> to vector<16x128xf32>
    %5 = arith.addf %2, %4 : vector<16x128xf32>
    %c0_5 = arith.constant 0 : index
    %c0_6 = arith.constant 0 : index
    %6 = vector.load %arg6[%c0_5, %c0_6] : memref<16x128xf32, #tpu.memory_space<vmem>>, vector<16x128xf32>
    tpu.vector_store %arg6[%c0_5, %c0_6], %5 {strides = array<i32>} : memref<16x128xf32, #tpu.memory_space<vmem>>, vector<16x128xf32>,
    return
  }
  func.func @transform_0(%arg0: i32, %arg1: i32, %arg2: i32) -> (i32, i32) {
    %c0_i32 = arith.constant 0 : i32
    return %arg0, %arg2 : i32, i32
  }
  func.func @transform_1(%arg0: i32, %arg1: i32, %arg2: i32) -> (i32, i32) {
    %c0_i32 = arith.constant 0 : i32
    return %arg1, %arg2 : i32, i32
  }
  func.func @transform_2(%arg0: i32, %arg1: i32, %arg2: i32) -> (i32, i32) {
    %c0_i32 = arith.constant 0 : i32
    %c0_i32_0 = arith.constant 0 : i32
    return %c0_i32, %arg1 : i32, i32
  }
  func.func @transform_3(%arg0: i32, %arg1: i32, %arg2: i32) -> (i32, i32) {
    %c0_i32 = arith.constant 0 : i32
    return %arg0, %arg1 : i32, i32
  }
}

</mosaic_0001>

<bundles_post_ra>
// kernel: tpu_custom_call.1
= control target key start
LH: loop header
LB: loop body
LE: loop exit
PB: predicated region body
PF: predicated region fallthrough
CT: control target
= control target key end

     0   :  { %8 = vsyncpa [#allocation3], 0  ;;  %s329_s0 = inlined_call_operand.hbm [shape: bf16[16,128], index: 0, kind: input, shape index: {}]   ;;  %s330_s1 = inlined_call_operand.hbm [shape: bf16[128,128], index: 1, kind: input, shape index: {}]   ;;  %s331_s2 = inlined_call_operand.vmem [shape: f32[1,128], index: 2, kind: input, shape index: {}]   ;;  %s332_s3 = inlined_call_operand.hbm [shape: f32[16,128], index: 3, kind: output, shape index: {}]  }
   0x1   :  { %9 = vsyncpa [#allocation6], 0 }
   0x2   :  { %10 = vsyncpa [#allocation4], 0  ;;  %s15_s14 = sshll.u32 %s329_s0, 4  ;;  %s290_s15 = smov [#allocation2]   ;;  %s16_s14 = int_to_ptr.hbm [resolvable:$true] %s15_s14 }
   0x3   :  { %s17_s16 = sshll.u32 %s290_s15, 4  ;;  %s28_s19 = sshll.u32 %s330_s1, 4  ;;  %s18_s16 = int_to_ptr.vmem [resolvable:$true] %s17_s16  ;;  %s29_s19 = int_to_ptr.hbm [resolvable:$true] %s28_s19 }
   0x4   :  { %s291_s20 = smov 64   ;;  %s292_s21 = smov 4  }
   0x5   :  { %23 = dma.hbm_to_vmem [thread:$0]  %s16_s14, 128, %s18_s16, [#allocation3], %s291_s20, %s291_s20, %s292_s21  }
   0x6   :  { %s293_s22 = smov [#allocation5]  }
   0x7   :  { %s30_s23 = sshll.u32 %s293_s22, 4  ;;  %s31_s23 = int_to_ptr.vmem [resolvable:$true] %s30_s23 }
   0x8   :  { %36 = dma.hbm_to_vmem [thread:$0]  %s29_s19, 1024, %s31_s23, [#allocation6], %s291_s20, %s291_s20, %s292_s21  }
   0x9   :  { %284 = dma.done.wait [#allocation3], 128  }
   0xa   :  { %285 = vsyncadd [#allocation3], 4294967168 }
   0xb   :  { %286 = dma.done.wait [#allocation6], 1024  }
   0xc   :  { %287 = vsyncadd [#allocation6], 4294966272  ;;  %v203_v0 = vld [vmem:[#allocation5 + $0x38] sm:$0xff]  ;;  %v202_v1 = vld [vmem:[#allocation5 + $0x30] sm:$0xff]  ;;  %s294_s24 = smov [#allocation7]   ;;  %s145_s28 = sshll.u32 %s332_s3, 4  ;;  %s146_s28 = int_to_ptr.hbm [resolvable:$true] %s145_s28 }
   0xd   :  { %123 = vmatpush.bf16.xpose.msra.mxu0 %v203_v0  ;;  %v201_v2 = vld [vmem:[#allocation5 + $0x28] sm:$0xff]  ;;  %v200_v3 = vld [vmem:[#allocation5 + $0x20] sm:$0xff]  ;;  %v199_v4 = vld [vmem:[#allocation5 + $0x18] sm:$0xff]  ;;  %s143_s25 = sshll.u32 %s294_s24, 4  ;;  %s295_s29 = smov 128   ;;  %s144_s25 = int_to_ptr.vmem [resolvable:$true] %s143_s25 }
   0xe   :  { %v198_v5 = vld [vmem:[#allocation5 + $0x10] sm:$0xff]  ;;  %v197_v6 = vld [vmem:[#allocation5 + $0x8] sm:$0xff]  ;;  %v196_v7 = vld [vmem:[#allocation5] sm:$0xff]  ;;  %s296_s30 = smov 8  }
   0xf   :  { %v195_v8 = vld [vmem:[#allocation2] sm:$0xff] }
  0x10   :  { %v211_v9 = vld [vmem:[%s331_s2] ss:$0 sm:$0xff] }
  0x15   :  { %124 = vmatpush.bf16.xpose.msra.mxu0 %v202_v1 }
  0x1d   :  { %125 = vmatpush.bf16.xpose.msra.mxu0 %v201_v2 }
  0x25   :  { %126 = vmatpush.bf16.xpose.msra.mxu0 %v200_v3 }
  0x2d   :  { %127 = vmatpush.bf16.xpose.msra.mxu0 %v199_v4 }
  0x35   :  { %128 = vmatpush.bf16.xpose.msra.mxu0 %v198_v5 }
  0x3d   :  { %129 = vmatpush.bf16.xpose.msra.mxu0 %v197_v6 }
  0x45   :  { %130 = vmatpush.bf16.xpose.msra.mxu0 %v196_v7 }
  0x4c   :  { %131 = vmatmul.bf16.vlgmr.msra.gmra.mxu0 %v195_v8 }
  0xc9   :  { %v132_v10 = vpop.f32.mrf.mxu0 }
  0xca   :  { %v133_v11 = vadd.f32 %v211_v9, %v132_v10 }
  0xcc   :  { %137 = vst [vmem:[#allocation7] sm:$0xff] %v133_v11 }
  0xd1   :  { %v134_v12 = vpop.f32.mrf.mxu0 }
  0xd2   :  { %v135_v13 = vadd.f32 %v211_v9, %v134_v12 }
  0xd4   :  { %138 = vst [vmem:[#allocation7 + $0x8] sm:$0xff] %v135_v13 }
  0xd5   :  { %151 = dma.vmem_to_hbm [thread:$0]  %s144_s25, 256, %s146_s28, [#allocation4], %s295_s29, %s295_s29, %s296_s30  }
  0xd6   :  { %288 = dma.done.wait [#allocation4], 256  }
  0xd7   :  { %289 = vsyncadd [#allocation4], 4294967040 }
  0xd8   :  { %156 = vsyncpa [#allocation3], 1 }
  0xd9   :  { %157 = vsyncpa [#allocation6], 1 }
  0xda   :  { %158 = vsyncpa [#allocation4], 1 }

</bundles_post_ra>
